<compile_context>
chip_gen: v7x
topology: tpu7x:2x2x1
jax: 0.10.0
libtpu: 0.0.40
codegen_flags: <defaults>
</compile_context>

<pallas_src>
import jax
import jax.numpy as jnp
from jax.experimental import pallas as pl
from jax.experimental.pallas import tpu as pltpu


def _round_up(x, m):
    return ((x + m - 1) // m) * m


def _cvr_tower_kernel(x_ref, w1_ref, b1_ref, w2_ref, b2_ref, o_ref):
    # First Linear on the MXU: (tile_b, D) @ (D, H_pad) -> (tile_b, H_pad), f32 acc.
    h = jnp.dot(x_ref[...], w1_ref[...], preferred_element_type=jnp.float32)
    # Bias + ReLU on the VPU.
    h = jnp.maximum(h + b1_ref[...], 0.0)
    # Second Linear (H_pad -> 1): VPU multiply + XLU lane-reduce, keep MXU free.
    logits = jnp.sum(h * w2_ref[...], axis=-1) + b2_ref[0, 0]   # (tile_b,)
    # Sigmoid (EUP exp), stored lane-dense: batch on the lane axis.
    tile_b = o_ref.shape[-1]
    o_ref[...] = jax.nn.sigmoid(logits).reshape(1, 1, tile_b).astype(o_ref.dtype)


def cvr_tower_forward(x, w1, b1, w2, b2, *, max_tile_b=512):
    """Fused CVRTower forward.

    x : (B, D) float32
    w1: (D, H), b1: (1, H)
    w2: (H, 1), b2: (1, 1)
    returns p_ctr: (B, 1) float32
    """
    B, D = x.shape
    H = w1.shape[1]
    assert w1.shape == (D, H)
    assert b1.shape == (1, H)
    assert w2.shape == (H, 1)
    assert b2.shape == (1, 1)

    x = x.astype(jnp.float32)
    w1 = w1.astype(jnp.float32)
    b1 = b1.astype(jnp.float32)
    w2 = w2.astype(jnp.float32)
    b2 = b2.astype(jnp.float32)

    # --- lane-fill the hidden dim (weight side only; zeros are exact no-ops) ---
    H_pad = _round_up(H, 128)
    if H_pad != H:
        w1 = jnp.pad(w1, ((0, 0), (0, H_pad - H)))
        b1 = jnp.pad(b1, ((0, 0), (0, H_pad - H)))
    w2_row = w2.reshape(1, H)
    if H_pad != H:
        w2_row = jnp.pad(w2_row, ((0, 0), (0, H_pad - H)))

    # --- batch tiling (tile_b multiple of 8, sized to stay well under VMEM) ---
    tile_b = min(max_tile_b, _round_up(B, 8))
    B_pad = _round_up(B, tile_b)
    if B_pad != B:
        x = jnp.pad(x, ((0, B_pad - B), (0, 0)))
    num_tiles = B_pad // tile_b

    cost = pl.CostEstimate(
        flops=2 * B_pad * D * H_pad + 2 * B_pad * H_pad,
        transcendentals=B_pad,
        bytes_accessed=4 * (B_pad * D + D * H_pad + 2 * H_pad + 1 + B_pad),
    )

    out = pl.pallas_call(
        _cvr_tower_kernel,
        out_shape=jax.ShapeDtypeStruct((num_tiles, 1, tile_b), jnp.float32),
        grid=(num_tiles,),
        in_specs=[
            pl.BlockSpec((tile_b, D), lambda i: (i, 0)),          # x: batch-tiled
            pl.BlockSpec((D, H_pad), lambda i: (0, 0)),           # W1: resident
            pl.BlockSpec((1, H_pad), lambda i: (0, 0)),           # b1: resident
            pl.BlockSpec((1, H_pad), lambda i: (0, 0)),           # w2 row: resident
            pl.BlockSpec(memory_space=pltpu.MemorySpace.SMEM),    # b2: scalar in SMEM
        ],
        out_specs=pl.BlockSpec((1, 1, tile_b), lambda i: (i, 0, 0)),
        compiler_params=pltpu.CompilerParams(
            dimension_semantics=("parallel",),
        ),
        cost_estimate=cost,
    )(x, w1, b1, w2_row, b2)

    # (num_tiles, 1, tile_b) -> (B, 1); drop padded rows.
    return out.reshape(B_pad, 1)[:B]


def init_params(key, input_dim, hidden_dim):
    """Deterministic init mirroring nn.Linear default (uniform +/- 1/sqrt(fan_in))."""
    k1, k2, k3, k4 = jax.random.split(key, 4)
    bound1 = 1.0 / jnp.sqrt(input_dim)
    bound2 = 1.0 / jnp.sqrt(hidden_dim)
    w1 = jax.random.uniform(k1, (input_dim, hidden_dim), jnp.float32, -bound1, bound1)
    b1 = jax.random.uniform(k2, (1, hidden_dim), jnp.float32, -bound1, bound1)
    w2 = jax.random.uniform(k3, (hidden_dim, 1), jnp.float32, -bound2, bound2)
    b2 = jax.random.uniform(k4, (1, 1), jnp.float32, -bound2, bound2)
    return w1, b1, w2, b2


def reference_forward(x, w1, b1, w2, b2):
    h = jnp.maximum(x @ w1 + b1, 0.0)
    return jax.nn.sigmoid(h @ w2 + b2)


if __name__ == "__main__":
    key = jax.random.PRNGKey(0)
    k_x, k_p = jax.random.split(key)

    batch = 8
    input_dim = 32
    hidden_dim = 32   # hidden_dims[0]

    x = jax.random.normal(k_x, (batch, input_dim), jnp.float32)
    w1, b1, w2, b2 = init_params(k_p, input_dim, hidden_dim)

    p_ctr = cvr_tower_forward(x, w1, b1, w2, b2)
    jax.block_until_ready(p_ctr)

    # sanity check vs pure-JAX reference
    ref = reference_forward(x, w1, b1, w2, b2)
    assert p_ctr.shape == (batch, 1)
    assert jnp.allclose(p_ctr, ref, atol=1e-5, rtol=1e-5)

    print("KERNEL_OK")
</pallas_src>

<mosaic_0001>
module attributes {stable_mosaic.version = 11 : i64} {
  func.func @_cvr_tower_kernel(%arg0: i32, %arg1: memref<8x32xf32, #tpu.memory_space<vmem>>, %arg2: memref<32x128xf32, #tpu.memory_space<vmem>>, %arg3: memref<1x128xf32, #tpu.memory_space<vmem>>, %arg4: memref<1x128xf32, #tpu.memory_space<vmem>>, %arg5: memref<1x1xf32, #tpu.memory_space<smem>>, %arg6: memref<1x1x8xf32, #tpu.memory_space<vmem>>) attributes {dimension_semantics = [#tpu.dimension_semantics<parallel>], iteration_bounds = array<i64: 1>, scalar_prefetch = 0 : i64, scratch_operands = 0 : i64, tpu.core_type = #tpu.core_type<tc>, window_params = [{transform_indices = @transform_0, window_bounds = array<i64: 8, 32>}, {pipeline_mode = #tpu.pipeline_mode<synchronous>, transform_indices = @transform_1, window_bounds = array<i64: 32, 128>}, {pipeline_mode = #tpu.pipeline_mode<synchronous>, transform_indices = @transform_2, window_bounds = array<i64: 1, 128>}, {pipeline_mode = #tpu.pipeline_mode<synchronous>, transform_indices = @transform_3, window_bounds = array<i64: 1, 128>}, {transform_indices = @transform_4, window_bounds = array<i64: 1, 1>}, {transform_indices = @transform_5, window_bounds = array<i64: 1, 1, 8>}]} {
    %c0 = arith.constant 0 : index
    %c0_0 = arith.constant 0 : index
    %0 = vector.load %arg1[%c0, %c0_0] : memref<8x32xf32, #tpu.memory_space<vmem>>, vector<8x32xf32>
    %c0_1 = arith.constant 0 : index
    %c0_2 = arith.constant 0 : index
    %1 = vector.load %arg2[%c0_1, %c0_2] : memref<32x128xf32, #tpu.memory_space<vmem>>, vector<32x128xf32>
    %cst = arith.constant dense<0.000000e+00> : vector<8x128xf32>
    %2 = tpu.matmul %0, %1, %cst {dimension_numbers = #tpu.dot_dimension_numbers<[1], [0], [0], [1], [0, 0, 1, 1], [], []>} : vector<8x32xf32>, vector<32x128xf32>, vector<8x128xf32> -> vector<8x128xf32>
    %c0_3 = arith.constant 0 : index
    %c0_4 = arith.constant 0 : index
    %3 = vector.load %arg3[%c0_3, %c0_4] : memref<1x128xf32, #tpu.memory_space<vmem>>, vector<1x128xf32>
    %4 = vector.broadcast %3 : vector<1x128xf32> to vector<8x128xf32>
    %5 = arith.addf %2, %4 : vector<8x128xf32>
    %cst_5 = arith.constant 0.000000e+00 : f32
    %6 = vector.broadcast %cst_5 : f32 to vector<8x128xf32>
    %7 = arith.maximumf %5, %6 : vector<8x128xf32>
    %c0_6 = arith.constant 0 : index
    %c0_7 = arith.constant 0 : index
    %8 = vector.load %arg4[%c0_6, %c0_7] : memref<1x128xf32, #tpu.memory_space<vmem>>, vector<1x128xf32>
    %9 = vector.broadcast %8 : vector<1x128xf32> to vector<8x128xf32>
    %10 = arith.mulf %7, %9 : vector<8x128xf32>
    %cst_8 = arith.constant dense<0.000000e+00> : vector<8xf32>
    %11 = vector.multi_reduction <add>, %10, %cst_8 [1] : vector<8x128xf32> to vector<8xf32>
    %c0_9 = arith.constant 0 : index
    %c0_10 = arith.constant 0 : index
    %12 = memref.load %arg5[%c0_9, %c0_10] : memref<1x1xf32, #tpu.memory_space<smem>>
    %13 = vector.broadcast %12 : f32 to vector<8xf32>
    %14 = arith.addf %11, %13 : vector<8xf32>
    %15 = arith.negf %14 : vector<8xf32>
    %16 = math.exp %15 : vector<8xf32>
    %cst_11 = arith.constant 1.000000e+00 : f32
    %17 = vector.broadcast %cst_11 : f32 to vector<8xf32>
    %18 = arith.addf %17, %16 : vector<8xf32>
    %19 = arith.divf %17, %18 : vector<8xf32>
    %20 = vector.shape_cast %19 : vector<8xf32> to vector<1x1x8xf32>
    %c0_12 = arith.constant 0 : index
    %c0_13 = arith.constant 0 : index
    %c0_14 = arith.constant 0 : index
    %21 = vector.load %arg6[%c0_12, %c0_13, %c0_14] : memref<1x1x8xf32, #tpu.memory_space<vmem>>, vector<1x1x8xf32>
    tpu.vector_store %arg6[%c0_12, %c0_13, %c0_14], %20 {strides = array<i32>} : memref<1x1x8xf32, #tpu.memory_space<vmem>>, vector<1x1x8xf32>,
    return
  }
  func.func @transform_0(%arg0: i32) -> (i32, i32) {
    %c0_i32 = arith.constant 0 : i32
    %c0_i32_0 = arith.constant 0 : i32
    return %arg0, %c0_i32 : i32, i32
  }
  func.func @transform_1(%arg0: i32) -> (i32, i32) {
    %c0_i32 = arith.constant 0 : i32
    %c0_i32_0 = arith.constant 0 : i32
    %c0_i32_1 = arith.constant 0 : i32
    return %c0_i32, %c0_i32_0 : i32, i32
  }
  func.func @transform_2(%arg0: i32) -> (i32, i32) {
    %c0_i32 = arith.constant 0 : i32
    %c0_i32_0 = arith.constant 0 : i32
    %c0_i32_1 = arith.constant 0 : i32
    return %c0_i32, %c0_i32_0 : i32, i32
  }
  func.func @transform_3(%arg0: i32) -> (i32, i32) {
    %c0_i32 = arith.constant 0 : i32
    %c0_i32_0 = arith.constant 0 : i32
    %c0_i32_1 = arith.constant 0 : i32
    return %c0_i32, %c0_i32_0 : i32, i32
  }
  func.func @transform_4(%arg0: i32) -> (i32, i32) {
    %c0_i32 = arith.constant 0 : i32
    %c0_i32_0 = arith.constant 0 : i32
    %c0_i32_1 = arith.constant 0 : i32
    return %c0_i32, %c0_i32_0 : i32, i32
  }
  func.func @transform_5(%arg0: i32) -> (i32, i32, i32) {
    %c0_i32 = arith.constant 0 : i32
    %c0_i32_0 = arith.constant 0 : i32
    %c0_i32_1 = arith.constant 0 : i32
    return %arg0, %c0_i32, %c0_i32_0 : i32, i32, i32
  }
}

</mosaic_0001>

<bundles_post_ra>
// kernel: tpu_custom_call.1
= control target key start
LH: loop header
LB: loop body
LE: loop exit
PB: predicated region body
PF: predicated region fallthrough
CT: control target
= control target key end

     0   :  { %11 = vsyncpa [#allocation4], 0  ;;  %s380_s0 = inlined_call_operand.hbm [shape: f32[8,32], index: 0, kind: input, shape index: {}]   ;;  %s381_s1 = inlined_call_operand.hbm [shape: f32[32,128], index: 1, kind: input, shape index: {}]   ;;  %s382_s2 = inlined_call_operand.vmem [shape: f32[1,128], index: 2, kind: input, shape index: {}]   ;;  %s383_s3 = inlined_call_operand.vmem [shape: f32[1,128], index: 3, kind: input, shape index: {}]   ;;  %s384_s4 = inlined_call_operand.<no memory space> [shape: f32[1,1], index: 4, kind: input, shape index: {}]   ;;  %s385_s5 = inlined_call_operand.hbm [shape: f32[1,1,8], index: 5, kind: output, shape index: {}]  }
   0x1   :  { %12 = vsyncpa [#allocation7], 0 }
   0x2   :  { %13 = vsyncpa [#allocation5], 0  ;;  %s290_s18 = smov [#allocation3]   ;;  %s291_s20 = smov [#allocation6]  }
   0x3   :  { %s20_s19 = sshll.u32 %s290_s18, 4  ;;  %s29_s21 = sshll.u32 %s291_s20, 4  ;;  %s21_s19 = int_to_ptr.vmem [resolvable:$true] %s20_s19  ;;  %s328_s21 = int_to_ptr.vmem [resolvable:$true] %s29_s21 }
   0x4   :  { %s218_s24 = scalar_lea.hbm %s380_s0, 128 }
   0x5   :  { %p219_p0 = scmp.ne.s32.totalorder %s380_s0, %s218_s24  ;;  %p222_p1 = scmp.lt.u32.totalorder %s218_s24, %s380_s0 }
   0x7   :  { %p224_p2 = pnand %p222_p1, %p219_p0 }
   0x9   :  { %227 = shalt.err (!%p224_p2)
}
   0xa   :  { %s228_s29 = scalar_lea.vmem %s21_s19, 128  ;;  %p233_p4 = scmp.lt.s32.totalorder %s21_s19, %s21_s19 }
   0xb   :  { %p229_p3 = scmp.ne.s32.totalorder %s21_s19, %s228_s29  ;;  %p234_p5 = scmp.lt.s32.totalorder %s228_s29, %s228_s29 }
   0xd   :  { %p235_p6 = por %p234_p5, %p233_p4 }
   0xf   :  { %p236_p7 = pnand %p235_p6, %p229_p3 }
  0x11   :  { %239 = shalt.err (!%p236_p7)
}
  0x12   :  { %23 = dma.hbm_to_vmem [thread:$0]  %s380_s0, 128, %s21_s19, [#allocation4]  }
  0x13   :  { %s240_s9 = scalar_lea.hbm %s381_s1, 512 }
  0x14   :  { %p241_p8 = scmp.ne.s32.totalorder %s381_s1, %s240_s9  ;;  %p244_p9 = scmp.lt.u32.totalorder %s240_s9, %s381_s1 }
  0x16   :  { %p246_p10 = pnand %p244_p9, %p241_p8 }
  0x18   :  { %249 = shalt.err (!%p246_p10)
}
  0x19   :  { %s250_s14 = scalar_lea.vmem %s328_s21, 512  ;;  %p255_p12 = scmp.lt.s32.totalorder %s328_s21, %s328_s21 }
  0x1a   :  { %p251_p11 = scmp.ne.s32.totalorder %s328_s21, %s250_s14  ;;  %p256_p13 = scmp.lt.s32.totalorder %s250_s14, %s250_s14 }
  0x1c   :  { %p257_p0 = por %p256_p13, %p255_p12 }
  0x1e   :  { %p258_p1 = pnand %p257_p0, %p251_p11 }
  0x20   :  { %261 = shalt.err (!%p258_p1)
}
  0x21   :  { %s292_s0 = smov 128   ;;  %s293_s15 = smov 8  }
  0x22   :  { %35 = dma.hbm_to_vmem [thread:$0]  %s381_s1, 512, %s328_s21, [#allocation7], %s292_s0, %s292_s0, %s293_s15  }
  0x23   :  { %284 = dma.done.wait [#allocation4], 128  }
  0x24   :  { %285 = vsyncadd [#allocation4], 4294967168 }
  0x25   :  { %286 = dma.done.wait [#allocation7], 512  }
  0x26   :  { %287 = vsyncadd [#allocation7], 4294966784  ;;  %v294_v0 = vmov 0.0|0.0   ;;  %vm295_vm0 = vmmov 0   ;;  %v296_v1 = vmov 0.0   ;;  %v49_v2 = vld [vmem:[#allocation6] sm:$0xff]  ;;  %v146_v16 = vstv %s384_s4 }
  0x27   :  { %200 = vmatprep.subr.bf16.mxu0 %v294_v0  ;;  %197 = vmatprep.mubr.msk.f32.mxu0 %vm295_vm0, %v296_v1  ;;  %v50_v3 = vld [vmem:[#allocation6 + $0x8] sm:$0xff]  ;;  %v51_v4 = vld [vmem:[#allocation6 + $0x10] sm:$0xff]  ;;  %v52_v6 = vld [vmem:[#allocation6 + $0x18] sm:$0xff]  ;;  %vm60_vm1 = vcmask 261120   ;;  %v155_v22 = vlaneseq  ;;  %vm162_vm2 = vcmask 57344  }
  0x28   :  { %v201_v5 = vpack.c.bf16 %v50_v3, %v49_v2  ;;  %v204_v7 = vpack.c.bf16 %v52_v6, %v51_v4  ;;  %v48_v8 = vld [vmem:[#allocation3] sm:$0xff] }
  0x29   :  { %v180_v9 = vld [vmem:[%s382_s2] ss:$0 sm:$0xff]  ;;  %v156_v23 = vand.u32 127, %v155_v22  ;;  %v158_v24 = vshrl.u32 %v155_v22, 7  ;;  %s297_s2 = smov [#allocation8]  }
  0x2a   :  { %202 = vmatpush3.bf16.msra.mxu0 %v201_v5  ;;  %v182_v13 = vld [vmem:[%s383_s3] ss:$0 sm:$0xff]  ;;  %s170_s3 = sshll.u32 %s297_s2, 4  ;;  %s171_s3 = int_to_ptr.vmem [resolvable:$true] %s170_s3 }
  0x2b   :  { %203 = vmatprep.subr.bf16.mxu0 %v294_v0  ;;  %v159_v25 = vsub.s32 %v156_v23, %v158_v24  ;;  %s262_s23 = scalar_lea.vmem %s171_s3, 16  ;;  %s266_s4 = scalar_lea.vmem %s171_s3, 32 }
  0x2c   :  { %p263_p2 = scmp.ne.s32.totalorder %s171_s3, %s262_s23  ;;  %p267_p3 = scmp.lt.s32.totalorder %s171_s3, %s171_s3 }
  0x2d   :  { %p268_p4 = scmp.lt.s32.totalorder %s266_s4, %s262_s23 }
  0x2e   :  { %205 = vmatpush3.bf16.msra.mxu0 %v204_v7 }
  0x2f   :  { %p269_p5 = por %p268_p4, %p267_p3 }
  0x31   :  { %198 = vmatmul.mubr.msk.f32.vlgmr.msra.gmra.mrb[0].mxu0 %vm60_vm1, %v48_v8  ;;  %p270_p6 = pnand %p269_p5, %p263_p2 }
 0x104   :  { %v130_v10 = vpop.f32.mrb[0].mxu0 }
 0x105   :  { %v131_v11 = vadd.f32 %v180_v9, %v130_v10  ;;  %v199_v12 = vpop.f32.mrb[1].mxu0 }
 0x107   :  { %v134_v14 = vmax.f32 %v131_v11, 0.0 }
 0x109   :  { %v142_v15 = vmul.f32 %v182_v13, %v134_v14 }
 0x10b   :  { %143 = vadd.xlane.f32.xlu0 %v142_v15 }
 0x198   :  { %v144_v17 = vpop.xlane.xlu0 %143 }
 0x199   :  { %v147_v18 = vadd.f32 %v146_v16, %v144_v17 }
 0x19b   :  { %v183_v19 = vmul.f32 -1.442695, %v147_v18 }
 0x19d   :  { %214 = vpow2.f32 %v183_v19 }
 0x1a7   :  { %v215_v20 = vpop.eup %214 }
 0x1a8   :  { %v151_v21 = vadd.f32 1.0, %v215_v20 }
 0x1aa   :  { %216 = vrcp.f32 %v151_v21 }
 0x1b4   :  { %v217_v26 = vpop.eup %216 }
 0x1b5   :  { %v160_v27 = vrot.slane %v217_v26, %v159_v25 }
 0x1b7   :  { %163 = vst.msk [vmem:[#allocation8] sm:$0x1] %vm162_vm2, %v160_v27 }
 0x1b8   :  { %273 = shalt.err (!%p270_p6)
}
 0x1b9   :  { %s274_s26 = scalar_lea.hbm %s385_s5, 16 }
 0x1ba   :  { %p275_p7 = scmp.ne.s32.totalorder %s385_s5, %s274_s26  ;;  %p278_p8 = scmp.lt.u32.totalorder %s274_s26, %s385_s5 }
 0x1bc   :  { %p280_p9 = pnand %p278_p8, %p275_p7 }
 0x1be   :  { %283 = shalt.err (!%p280_p9)
}
 0x1bf   :  { %173 = dma.vmem_to_hbm [thread:$0]  %s171_s3, 16, %s385_s5, [#allocation5]  }
 0x1c0   :  { %288 = dma.done.wait [#allocation5], 16  }
 0x1c1   :  { %289 = vsyncadd [#allocation5], 4294967280 }
 0x1c2   :  { %177 = vsyncpa [#allocation4], 1 }
 0x1c3   :  { %178 = vsyncpa [#allocation7], 1 }
 0x1c4   :  { %179 = vsyncpa [#allocation5], 1 }

</bundles_post_ra>
